<compile_context>
chip_gen: v5e
topology: v5e:2x2
jax: 0.10.0
libtpu: 0.0.40
codegen_flags: <defaults>
</compile_context>

<pallas_src>
import functools

import jax
import jax.numpy as jnp
from jax import lax
from jax.experimental import pallas as pl
from jax.experimental.pallas import tpu as pltpu


def _round_up(n, m):
    return ((n + m - 1) // m) * m


def _pick_tile(s, target=256):
    """Largest multiple-of-8 divisor of s that is <= target (or s itself)."""
    if s <= target:
        return s
    t = target
    while t >= 8:
        if s % t == 0:
            return t
        t -= 8
    return s


def _flash_attention_kernel(xq_ref, xkv_ref, wq_ref, wkv_ref, o_ref,
                            q_scr, m_scr, l_scr, acc_scr,
                            *, seq_len, head_dim):
    j = pl.program_id(1)

    @pl.when(j == 0)
    def _init():
        # Project this query tile once (amortized over all key tiles) and fold
        # the 1/seq_len scale into Q (tq*P multiplies instead of tq*tk).
        q = jnp.dot(xq_ref[...], wq_ref[...], preferred_element_type=jnp.float32)
        q_scr[...] = q * (1.0 / seq_len)
        m_scr[...] = jnp.full(m_scr.shape, -jnp.inf, dtype=m_scr.dtype)
        l_scr[...] = jnp.zeros(l_scr.shape, dtype=l_scr.dtype)
        acc_scr[...] = jnp.zeros(acc_scr.shape, dtype=acc_scr.dtype)

    # Fused K/V projection for this key tile: one MXU pass, 2*head_dim lanes.
    kv = jnp.dot(xkv_ref[...], wkv_ref[...], preferred_element_type=jnp.float32)
    k = kv[:, :head_dim]
    v = kv[:, head_dim:]

    # scores (tq, tk): contract over the head dim without materializing k.T.
    s = lax.dot_general(q_scr[...], k, (((1,), (1,)), ((), ())),
                        preferred_element_type=jnp.float32)

    # Online (flash) softmax over the key axis; all softmax math stays f32.
    m_prev = m_scr[...]
    m_new = jnp.maximum(m_prev, jnp.max(s, axis=1, keepdims=True))
    alpha = jnp.exp(m_prev - m_new)
    p = jnp.exp(s - m_new)
    l_scr[...] = alpha * l_scr[...] + jnp.sum(p, axis=1, keepdims=True)
    acc_scr[...] = alpha * acc_scr[...] + jnp.dot(
        p, v, preferred_element_type=jnp.float32)
    m_scr[...] = m_new

    @pl.when(j == pl.num_programs(1) - 1)
    def _finalize():
        inv_l = pl.reciprocal(l_scr[...], approx=True)   # EUP slot (nearly free)
        o_ref[...] = (acc_scr[...] * inv_l).astype(o_ref.dtype)


def _attention_forward(x, wq_t, wkv_t, size_out):
    """x: (S, size_in); wq_t: (size_in, P); wkv_t: (size_in, 2P). Returns (S, size_out)."""
    S, size_in = x.shape
    P = wq_t.shape[1]

    tq = _pick_tile(S, 256)
    tk = _pick_tile(S, 256)
    nq, nk = S // tq, S // tk

    # Rough VMEM budget (double-buffered tiles + resident weights + f32 scratch
    # + in-kernel temporaries) with 2x headroom, capped well under v7x's 64 MiB.
    itemsize = jnp.dtype(x.dtype).itemsize
    est = ((2 * tq * size_in + 2 * tk * size_in + 2 * tq * P) * itemsize
           + (size_in * P + size_in * 2 * P) * 2 * itemsize
           + 4 * (2 * tq * P + 4 * tq * 128)
           + 4 * (3 * tq * tk + tk * 2 * P))
    vmem_limit = int(min(48 * 1024 * 1024, max(8 * 1024 * 1024, 2 * est)))

    kernel = functools.partial(_flash_attention_kernel, seq_len=S, head_dim=P)

    out = pl.pallas_call(
        kernel,
        out_shape=jax.ShapeDtypeStruct((S, P), x.dtype),
        grid_spec=pltpu.PrefetchScalarGridSpec(
            num_scalar_prefetch=0,
            grid=(nq, nk),                                        # (query tiles, key tiles)
            in_specs=[
                pl.BlockSpec((tq, size_in), lambda i, j: (i, 0)),      # x rows for Q
                pl.BlockSpec((tk, size_in), lambda i, j: (j, 0)),      # x rows for K/V
                pl.BlockSpec((size_in, P), lambda i, j: (0, 0)),       # Wq   (resident)
                pl.BlockSpec((size_in, 2 * P), lambda i, j: (0, 0)),   # Wkv  (resident, fused)
            ],
            out_specs=pl.BlockSpec((tq, P), lambda i, j: (i, 0)),
            scratch_shapes=[
                pltpu.VMEM((tq, P), jnp.float32),   # pre-scaled Q tile
                pltpu.VMEM((tq, 1), jnp.float32),   # running max
                pltpu.VMEM((tq, 1), jnp.float32),   # running softmax denom
                pltpu.VMEM((tq, P), jnp.float32),   # output accumulator
            ],
        ),
        compiler_params=pltpu.CompilerParams(
            dimension_semantics=("parallel", "arbitrary"),
            vmem_limit_bytes=vmem_limit,
        ),
    )(x, x, wq_t, wkv_t)

    return out[:, :size_out] if P != size_out else out


def make_attention_layer(wq, wk, wv):
    """One-time init: torch-layout (size_out, size_in) Linear weights ->
    pre-transposed, lane-padded (to 128), K/V-fused kernel weights.
    Returns apply(x) -> (S, size_out)."""
    size_out, size_in = wq.shape
    P = _round_up(size_out, 128)

    def prep(w):                       # transpose + pad ONCE, outside the hot path
        wt = jnp.transpose(w)          # (size_in, size_out)
        if P != size_out:
            wt = jnp.pad(wt, ((0, 0), (0, P - size_out)))
        return wt

    wq_t = prep(wq)                                         # (size_in, P)
    wkv_t = jnp.concatenate([prep(wk), prep(wv)], axis=1)   # (size_in, 2P) fused

    return jax.jit(lambda x: _attention_forward(x, wq_t, wkv_t, size_out))


def _reference(x, wq, wk, wv):
    hp = lax.Precision.HIGHEST
    q = jnp.dot(x, wq.T, precision=hp)
    k = jnp.dot(x, wk.T, precision=hp)
    v = jnp.dot(x, wv.T, precision=hp)
    scores = jnp.dot(q, k.T, precision=hp) / k.shape[0]
    return jnp.dot(jax.nn.softmax(scores, axis=1), v, precision=hp)


if __name__ == "__main__":
    key = jax.random.PRNGKey(0)
    k_x, k_q, k_k, k_v = jax.random.split(key, 4)

    # Small shapes matching the module's intent.
    S, size_in, size_out = 8, 32, 32
    x = jax.random.normal(k_x, (S, size_in), dtype=jnp.float32)
    bound = 1.0 / (size_in ** 0.5)
    wq = jax.random.uniform(k_q, (size_out, size_in), jnp.float32, -bound, bound)
    wk = jax.random.uniform(k_k, (size_out, size_in), jnp.float32, -bound, bound)
    wv = jax.random.uniform(k_v, (size_out, size_in), jnp.float32, -bound, bound)

    layer = make_attention_layer(wq, wk, wv)
    out = jax.block_until_ready(layer(x))
    ref = _reference(x, wq, wk, wv)
    assert out.shape == (S, size_out)
    err = float(jnp.max(jnp.abs(out - ref)))
    assert jnp.allclose(out, ref, atol=2e-3, rtol=2e-3), f"mismatch vs reference: {err}"

    # Larger shape to exercise the tiled (multi-block) flash path: grid (2, 2).
    S2, in2, out2 = 512, 128, 64
    k_x2, k_q2, k_k2, k_v2 = jax.random.split(jax.random.PRNGKey(1), 4)
    x2 = jax.random.normal(k_x2, (S2, in2), dtype=jnp.float32)
    b2 = 1.0 / (in2 ** 0.5)
    wq2 = jax.random.uniform(k_q2, (out2, in2), jnp.float32, -b2, b2)
    wk2 = jax.random.uniform(k_k2, (out2, in2), jnp.float32, -b2, b2)
    wv2 = jax.random.uniform(k_v2, (out2, in2), jnp.float32, -b2, b2)
    layer2 = make_attention_layer(wq2, wk2, wv2)
    out2_val = jax.block_until_ready(layer2(x2))
    ref2 = _reference(x2, wq2, wk2, wv2)
    assert out2_val.shape == (S2, out2)
    err2 = float(jnp.max(jnp.abs(out2_val - ref2)))
    assert jnp.allclose(out2_val, ref2, atol=2e-3, rtol=2e-3), f"tiled mismatch: {err2}"

    print("KERNEL_OK")
</pallas_src>

<mosaic_0001>
module attributes {stable_mosaic.version = 11 : i64} {
  func.func @_flash_attention_kernel(%arg0: i32, %arg1: i32, %arg2: memref<8x32xf32, #tpu.memory_space<vmem>>, %arg3: memref<8x32xf32, #tpu.memory_space<vmem>>, %arg4: memref<32x128xf32, #tpu.memory_space<vmem>>, %arg5: memref<32x256xf32, #tpu.memory_space<vmem>>, %arg6: memref<8x128xf32, #tpu.memory_space<vmem>>, %arg7: memref<8x128xf32, #tpu.memory_space<vmem>>, %arg8: memref<8x1xf32, #tpu.memory_space<vmem>>, %arg9: memref<8x1xf32, #tpu.memory_space<vmem>>, %arg10: memref<8x128xf32, #tpu.memory_space<vmem>>) attributes {dimension_semantics = [#tpu.dimension_semantics<parallel>, #tpu.dimension_semantics<arbitrary>], iteration_bounds = array<i64: 1, 1>, scalar_prefetch = 0 : i64, scratch_operands = 4 : i64, tpu.core_type = #tpu.core_type<tc>, window_params = [{transform_indices = @transform_0, window_bounds = array<i64: 8, 32>}, {transform_indices = @transform_1, window_bounds = array<i64: 8, 32>}, {pipeline_mode = #tpu.pipeline_mode<synchronous>, transform_indices = @transform_2, window_bounds = array<i64: 32, 128>}, {pipeline_mode = #tpu.pipeline_mode<synchronous>, transform_indices = @transform_3, window_bounds = array<i64: 32, 256>}, {transform_indices = @transform_4, window_bounds = array<i64: 8, 128>}]} {
    %c0_i32 = arith.constant 0 : i32
    %0 = arith.cmpi eq, %arg1, %c0_i32 : i32
    %1 = arith.extui %0 : i1 to i32
    %c0_i32_0 = arith.constant 0 : i32
    %2 = arith.cmpi ne, %1, %c0_i32_0 : i32
    scf.if %2 {
      %c0_24 = arith.constant 0 : index
      %c0_25 = arith.constant 0 : index
      %35 = vector.load %arg2[%c0_24, %c0_25] : memref<8x32xf32, #tpu.memory_space<vmem>>, vector<8x32xf32>
      %c0_26 = arith.constant 0 : index
      %c0_27 = arith.constant 0 : index
      %36 = vector.load %arg4[%c0_26, %c0_27] : memref<32x128xf32, #tpu.memory_space<vmem>>, vector<32x128xf32>
      %cst_28 = arith.constant dense<0.000000e+00> : vector<8x128xf32>
      %37 = tpu.matmul %35, %36, %cst_28 {dimension_numbers = #tpu.dot_dimension_numbers<[1], [0], [0], [1], [0, 0, 1, 1], [], []>} : vector<8x32xf32>, vector<32x128xf32>, vector<8x128xf32> -> vector<8x128xf32>
      %cst_29 = arith.constant 1.250000e-01 : f32
      %38 = vector.broadcast %cst_29 : f32 to vector<8x128xf32>
      %39 = arith.mulf %37, %38 : vector<8x128xf32>
      %c0_30 = arith.constant 0 : index
      %c0_31 = arith.constant 0 : index
      %40 = vector.load %arg7[%c0_30, %c0_31] : memref<8x128xf32, #tpu.memory_space<vmem>>, vector<8x128xf32>
      tpu.vector_store %arg7[%c0_30, %c0_31], %39 {strides = array<i32>} : memref<8x128xf32, #tpu.memory_space<vmem>>, vector<8x128xf32>,
      %cst_32 = arith.constant 0xFF800000 : f32
      %41 = vector.broadcast %cst_32 : f32 to vector<8x1xf32>
      %c0_33 = arith.constant 0 : index
      %c0_34 = arith.constant 0 : index
      %42 = vector.load %arg8[%c0_33, %c0_34] : memref<8x1xf32, #tpu.memory_space<vmem>>, vector<8x1xf32>
      tpu.vector_store %arg8[%c0_33, %c0_34], %41 {strides = array<i32>} : memref<8x1xf32, #tpu.memory_space<vmem>>, vector<8x1xf32>,
      %cst_35 = arith.constant 0.000000e+00 : f32
      %43 = vector.broadcast %cst_35 : f32 to vector<8x1xf32>
      %c0_36 = arith.constant 0 : index
      %c0_37 = arith.constant 0 : index
      %44 = vector.load %arg9[%c0_36, %c0_37] : memref<8x1xf32, #tpu.memory_space<vmem>>, vector<8x1xf32>
      tpu.vector_store %arg9[%c0_36, %c0_37], %43 {strides = array<i32>} : memref<8x1xf32, #tpu.memory_space<vmem>>, vector<8x1xf32>,
      %cst_38 = arith.constant 0.000000e+00 : f32
      %45 = vector.broadcast %cst_38 : f32 to vector<8x128xf32>
      %c0_39 = arith.constant 0 : index
      %c0_40 = arith.constant 0 : index
      %46 = vector.load %arg10[%c0_39, %c0_40] : memref<8x128xf32, #tpu.memory_space<vmem>>, vector<8x128xf32>
      tpu.vector_store %arg10[%c0_39, %c0_40], %45 {strides = array<i32>} : memref<8x128xf32, #tpu.memory_space<vmem>>, vector<8x128xf32>,
    } else {
    }
    %c0 = arith.constant 0 : index
    %c0_1 = arith.constant 0 : index
    %3 = vector.load %arg3[%c0, %c0_1] : memref<8x32xf32, #tpu.memory_space<vmem>>, vector<8x32xf32>
    %c0_2 = arith.constant 0 : index
    %c0_3 = arith.constant 0 : index
    %4 = vector.load %arg5[%c0_2, %c0_3] : memref<32x256xf32, #tpu.memory_space<vmem>>, vector<32x256xf32>
    %cst = arith.constant dense<0.000000e+00> : vector<8x256xf32>
    %5 = tpu.matmul %3, %4, %cst {dimension_numbers = #tpu.dot_dimension_numbers<[1], [0], [0], [1], [0, 0, 1, 1], [], []>} : vector<8x32xf32>, vector<32x256xf32>, vector<8x256xf32> -> vector<8x256xf32>
    %6 = vector.extract_strided_slice %5 {offsets = [0, 0], sizes = [8, 128], strides = [1, 1]} : vector<8x256xf32> to vector<8x128xf32>
    %7 = vector.extract_strided_slice %5 {offsets = [0, 128], sizes = [8, 128], strides = [1, 1]} : vector<8x256xf32> to vector<8x128xf32>
    %c0_4 = arith.constant 0 : index
    %c0_5 = arith.constant 0 : index
    %8 = vector.load %arg7[%c0_4, %c0_5] : memref<8x128xf32, #tpu.memory_space<vmem>>, vector<8x128xf32>
    %cst_6 = arith.constant dense<0.000000e+00> : vector<8x8xf32>
    %9 = tpu.matmul %8, %6, %cst_6 {dimension_numbers = #tpu.dot_dimension_numbers<[1], [1], [0], [0], [0, 0, 1, 0], [], []>} : vector<8x128xf32>, vector<8x128xf32>, vector<8x8xf32> -> vector<8x8xf32>
    %c0_7 = arith.constant 0 : index
    %c0_8 = arith.constant 0 : index
    %10 = vector.load %arg8[%c0_7, %c0_8] : memref<8x1xf32, #tpu.memory_space<vmem>>, vector<8x1xf32>
    %cst_9 = arith.constant dense<0xFF800000> : vector<8xf32>
    %11 = vector.multi_reduction <maximumf>, %9, %cst_9 [1] : vector<8x8xf32> to vector<8xf32>
    %12 = vector.shape_cast %11 : vector<8xf32> to vector<8x1xf32>
    %13 = arith.maximumf %10, %12 : vector<8x1xf32>
    %14 = arith.subf %10, %13 : vector<8x1xf32>
    %15 = math.exp %14 : vector<8x1xf32>
    %16 = vector.broadcast %13 : vector<8x1xf32> to vector<8x8xf32>
    %17 = arith.subf %9, %16 : vector<8x8xf32>
    %18 = math.exp %17 : vector<8x8xf32>
    %c0_10 = arith.constant 0 : index
    %c0_11 = arith.constant 0 : index
    %19 = vector.load %arg9[%c0_10, %c0_11] : memref<8x1xf32, #tpu.memory_space<vmem>>, vector<8x1xf32>
    %20 = arith.mulf %15, %19 : vector<8x1xf32>
    %cst_12 = arith.constant dense<0.000000e+00> : vector<8xf32>
    %21 = vector.multi_reduction <add>, %18, %cst_12 [1] : vector<8x8xf32> to vector<8xf32>
    %22 = vector.shape_cast %21 : vector<8xf32> to vector<8x1xf32>
    %23 = arith.addf %20, %22 : vector<8x1xf32>
    %c0_13 = arith.constant 0 : index
    %c0_14 = arith.constant 0 : index
    %24 = vector.load %arg9[%c0_13, %c0_14] : memref<8x1xf32, #tpu.memory_space<vmem>>, vector<8x1xf32>
    tpu.vector_store %arg9[%c0_13, %c0_14], %23 {strides = array<i32>} : memref<8x1xf32, #tpu.memory_space<vmem>>, vector<8x1xf32>,
    %c0_15 = arith.constant 0 : index
    %c0_16 = arith.constant 0 : index
    %25 = vector.load %arg10[%c0_15, %c0_16] : memref<8x128xf32, #tpu.memory_space<vmem>>, vector<8x128xf32>
    %26 = vector.broadcast %15 : vector<8x1xf32> to vector<8x128xf32>
    %27 = arith.mulf %26, %25 : vector<8x128xf32>
    %cst_17 = arith.constant dense<0.000000e+00> : vector<8x128xf32>
    %28 = tpu.matmul %18, %7, %cst_17 {dimension_numbers = #tpu.dot_dimension_numbers<[1], [0], [0], [1], [0, 0, 1, 1], [], []>} : vector<8x8xf32>, vector<8x128xf32>, vector<8x128xf32> -> vector<8x128xf32>
    %29 = arith.addf %27, %28 : vector<8x128xf32>
    %c0_18 = arith.constant 0 : index
    %c0_19 = arith.constant 0 : index
    %30 = vector.load %arg10[%c0_18, %c0_19] : memref<8x128xf32, #tpu.memory_space<vmem>>, vector<8x128xf32>
    tpu.vector_store %arg10[%c0_18, %c0_19], %29 {strides = array<i32>} : memref<8x128xf32, #tpu.memory_space<vmem>>, vector<8x128xf32>,
    %c0_20 = arith.constant 0 : index
    %c0_21 = arith.constant 0 : index
    %31 = vector.load %arg8[%c0_20, %c0_21] : memref<8x1xf32, #tpu.memory_space<vmem>>, vector<8x1xf32>
    tpu.vector_store %arg8[%c0_20, %c0_21], %13 {strides = array<i32>} : memref<8x1xf32, #tpu.memory_space<vmem>>, vector<8x1xf32>,
    %c0_i32_22 = arith.constant 0 : i32
    %32 = arith.cmpi eq, %arg1, %c0_i32_22 : i32
    %33 = arith.extui %32 : i1 to i32
    %c0_i32_23 = arith.constant 0 : i32
    %34 = arith.cmpi ne, %33, %c0_i32_23 : i32
    scf.if %34 {
      %c0_24 = arith.constant 0 : index
      %c0_25 = arith.constant 0 : index
      %35 = vector.load %arg9[%c0_24, %c0_25] : memref<8x1xf32, #tpu.memory_space<vmem>>, vector<8x1xf32>
      %36 = tpu.reciprocal %35 {approx = true} : vector<8x1xf32> -> vector<8x1xf32>
      %c0_26 = arith.constant 0 : index
      %c0_27 = arith.constant 0 : index
      %37 = vector.load %arg10[%c0_26, %c0_27] : memref<8x128xf32, #tpu.memory_space<vmem>>, vector<8x128xf32>
      %38 = vector.broadcast %36 : vector<8x1xf32> to vector<8x128xf32>
      %39 = arith.mulf %37, %38 : vector<8x128xf32>
      %c0_28 = arith.constant 0 : index
      %c0_29 = arith.constant 0 : index
      %40 = vector.load %arg6[%c0_28, %c0_29] : memref<8x128xf32, #tpu.memory_space<vmem>>, vector<8x128xf32>
      tpu.vector_store %arg6[%c0_28, %c0_29], %39 {strides = array<i32>} : memref<8x128xf32, #tpu.memory_space<vmem>>, vector<8x128xf32>,
    } else {
    }
    return
  }
  func.func @transform_0(%arg0: i32, %arg1: i32) -> (i32, i32) {
    %c0_i32 = arith.constant 0 : i32
    %c0_i32_0 = arith.constant 0 : i32
    return %arg0, %c0_i32 : i32, i32
  }
  func.func @transform_1(%arg0: i32, %arg1: i32) -> (i32, i32) {
    %c0_i32 = arith.constant 0 : i32
    %c0_i32_0 = arith.constant 0 : i32
    return %arg1, %c0_i32 : i32, i32
  }
  func.func @transform_2(%arg0: i32, %arg1: i32) -> (i32, i32) {
    %c0_i32 = arith.constant 0 : i32
    %c0_i32_0 = arith.constant 0 : i32
    %c0_i32_1 = arith.constant 0 : i32
    return %c0_i32, %c0_i32_0 : i32, i32
  }
  func.func @transform_3(%arg0: i32, %arg1: i32) -> (i32, i32) {
    %c0_i32 = arith.constant 0 : i32
    %c0_i32_0 = arith.constant 0 : i32
    %c0_i32_1 = arith.constant 0 : i32
    return %c0_i32, %c0_i32_0 : i32, i32
  }
  func.func @transform_4(%arg0: i32, %arg1: i32) -> (i32, i32) {
    %c0_i32 = arith.constant 0 : i32
    %c0_i32_0 = arith.constant 0 : i32
    return %arg0, %c0_i32 : i32, i32
  }
}

</mosaic_0001>

<bundles_post_ra>
// kernel: _lambda_.1
= control target key start
LH: loop header
LB: loop body
LE: loop exit
PB: predicated region body
PF: predicated region fallthrough
CT: control target
= control target key end

     0   :  { %9 = vsyncpa [#allocation7], 0  ;;  %s495_s0 = inlined_call_operand.hbm [shape: f32[8,32], index: 0, kind: input, shape index: {}, may-alias: {0,1}]   ;;  %s496_s1 = inlined_call_operand.hbm [shape: f32[8,32], index: 1, kind: input, shape index: {}, may-alias: {0,1}]   ;;  %s497_s2 = inlined_call_operand.hbm [shape: f32[32,128], index: 2, kind: input, shape index: {}]   ;;  %s498_s3 = inlined_call_operand.hbm [shape: f32[32,256], index: 3, kind: input, shape index: {}]   ;;  %s499_s4 = inlined_call_operand.hbm [shape: f32[8,128], index: 4, kind: output, shape index: {}]  }
   0x1   :  { %10 = vsyncpa [#allocation10], 0 }
   0x2   :  { %11 = vsyncpa [#allocation13], 0  ;;  %s29_s17 = sshll.u32 %s496_s1, 4  ;;  %s30_s17 = int_to_ptr.hbm [resolvable:$true] %s29_s17 }
   0x3   :  { %12 = vsyncpa [#allocation8], 0  ;;  %s433_s18 = smov [#allocation9]   ;;  %s18_s22 = sshll.u32 %s495_s0, 4  ;;  %s19_s22 = int_to_ptr.hbm [resolvable:$true] %s18_s22 }
   0x4   :  { %s31_s19 = sshll.u32 %s433_s18, 4  ;;  %s434_s23 = smov [#allocation6]   ;;  %s32_s19 = int_to_ptr.vmem [resolvable:$true] %s31_s19 }
   0x5   :  { %34 = dma.hbm_to_vmem [thread:$0]  %s30_s17, 128, %s32_s19, [#allocation10]  }
   0x6   :  { %s20_s24 = sshll.u32 %s434_s23, 4  ;;  %s39_s27 = sshll.u32 %s497_s2, 4  ;;  %s21_s24 = int_to_ptr.vmem [resolvable:$true] %s20_s24  ;;  %s40_s27 = int_to_ptr.hbm [resolvable:$true] %s39_s27 }
   0x7   :  { %23 = dma.hbm_to_vmem [thread:$0]  %s19_s22, 128, %s21_s24, [#allocation7]  }
   0x8   :  { %s435_s1 = smov [#allocation11]   ;;  %s52_s5 = sshll.u32 %s498_s3, 4  ;;  %s53_s5 = int_to_ptr.hbm [resolvable:$true] %s52_s5 }
   0x9   :  { %s41_s28 = sshll.u32 %s435_s1, 4  ;;  %s436_s6 = smov 128   ;;  %s42_s28 = int_to_ptr.vmem [resolvable:$true] %s41_s28 }
   0xa   :  { %s437_s0 = smov 8   ;;  %s438_s7 = smov [#allocation12]  }
   0xb   :  { %47 = dma.hbm_to_vmem [thread:$0]  %s40_s27, 512, %s42_s28, [#allocation10], %s436_s6, %s436_s6, %s437_s0  }
   0xc   :  { %s54_s8 = sshll.u32 %s438_s7, 4  ;;  %s439_s9 = smov 256   ;;  %s55_s8 = int_to_ptr.vmem [resolvable:$true] %s54_s8 }
   0xd   :  { %s440_s10 = smov 16  }
   0xe   :  { %60 = dma.hbm_to_vmem [thread:$0]  %s53_s5, 1024, %s55_s8, [#allocation13], %s439_s9, %s439_s9, %s440_s10  }
   0xf   :  { %425 = dma.done.wait [#allocation7], 128  }
  0x10   :  { %426 = vsyncadd [#allocation7], 4294967168 }
  0x11   :  { %427 = dma.done.wait [#allocation10], 640  }
  0x12   :  { %428 = vsyncadd [#allocation10], 4294966656 }
  0x13   :  { %429 = dma.done.wait [#allocation13], 1024  }
  0x14   :  { %430 = vsyncadd [#allocation13], 4294966272  ;;  %v123_v0 = vld [vmem:[#allocation12 + $0x30] sm:$0xff]  ;;  %v85_v1 = vld [vmem:[#allocation11 + $0x18] sm:$0xff]  ;;  %vm86_vm0 = vcmask 261120   ;;  %vm112_vm1 = vcmask 7168  }
  0x15   :  { %v121_v2 = vld [vmem:[#allocation12 + $0x20] sm:$0xff]  ;;  %141 = vmatpush.msra.mxu1 %v123_v0  ;;  %102 = vmatpush.msra.mxu0 %v85_v1  ;;  %v84_v3 = vld [vmem:[#allocation11 + $0x10] sm:$0xff]  ;;  %v83_v5 = vld [vmem:[#allocation11 + $0x8] sm:$0xff]  ;;  %v441_v15 = vmov -inf   ;;  %vm191_vm2 = vcmask 64512   ;;  %v442_v20 = vmov 0  }
  0x16   :  { %v119_v4 = vld [vmem:[#allocation12 + $0x10] sm:$0xff]  ;;  %v117_v6 = vld [vmem:[#allocation12] sm:$0xff]  ;;  %v116_v8 = vld [vmem:[#allocation9] sm:$0xff]  ;;  %113 = vst.msk [vmem:[#allocation3] sm:$0xff] %vm112_vm1, %v441_v15  ;;  %296 = vset.pattern.permute.xlu0 %v442_v20  ;;  %297 = vset.pattern.permute.xlu1 %v442_v20  ;;  %v443_v21 = vmov 0.0   ;;  %s444_s2 = smov [#allocation14]  }
  0x17   :  { %142 = vmatpush.msra.mxu1 %v121_v2  ;;  %103 = vmatpush.msra.mxu0 %v84_v3  ;;  %v82_v7 = vld [vmem:[#allocation11] sm:$0xff]  ;;  %v81_v9 = vld [vmem:[#allocation6] sm:$0xff]  ;;  %v124_v13 = vld [vmem:[#allocation12 + $0x38] sm:$0xff]  ;;  %114 = vst.msk [vmem:[#allocation4] sm:$0xff] %vm112_vm1, %v443_v21  ;;  %s266_s3 = sshll.u32 %s444_s2, 4  ;;  %s268_s13 = sshll.u32 %s499_s4, 4  ;;  %s267_s3 = int_to_ptr.vmem [resolvable:$true] %s266_s3  ;;  %s269_s13 = int_to_ptr.hbm [resolvable:$true] %s268_s13 }
  0x18   :  { %v122_v14 = vld [vmem:[#allocation12 + $0x28] sm:$0xff]  ;;  %161 = vmatpush.msra.mxu2 %v124_v13  ;;  %v120_v16 = vld [vmem:[#allocation12 + $0x18] sm:$0xff]  ;;  %298 = vset.pattern.permute.xlu2 %v442_v20 }
  0x19   :  { %143 = vmatpush.msra.mxu1 %v119_v4  ;;  %104 = vmatpush.msra.mxu0 %v83_v5  ;;  %v118_v17 = vld [vmem:[#allocation12 + $0x8] sm:$0xff] }
  0x1a   :  { %162 = vmatpush.msra.mxu2 %v122_v14 }
  0x1b   :  { %144 = vmatpush.msra.mxu1 %v117_v6  ;;  %105 = vmatpush.msra.mxu0 %v82_v7 }
  0x1c   :  { %281 = vmatmul.msk.f32.vlgmr.msra.gmra.mxu1 %vm86_vm0, %v116_v8  ;;  %280 = vmatmul.msk.f32.vlgmr.msra.gmra.mxu0 %vm86_vm0, %v81_v9 }
  0x1d   :  { %163 = vmatpush.msra.mxu2 %v120_v16  ;;  %v190_v22 = vld [vmem:[#allocation3] sm:$0xff] }
  0x1e   :  { %v207_v34 = vld [vmem:[#allocation4] sm:$0xff] }
  0x1f   :  { %164 = vmatpush.msra.mxu2 %v118_v17 }
  0x20   :  { %282 = vmatmul.msk.f32.vlgmr.msra.gmra.mxu2 %vm86_vm0, %v116_v8 }
  0x99   :  { %v146_v10 = vpop.f32.mrf.mxu1  ;;  %v107_v11 = vpop.f32.mrf.mxu0 }
  0x9a   :  { %v110_v12 = vmul.f32 0.125, %v107_v11  ;;  %185 = vmatpush.xpose.msra.mxu3 %v146_v10 }
  0x9d   :  { %186 = vmatmul.f32.vlgmr.msra.gmra.mxu3 %v110_v12 }
  0xa3   :  { %v166_v26 = vpop.f32.mrf.mxu2 }
  0xa4   :  { %240 = vmatpush.msrb.mxu3 %v166_v26 }
 0x120   :  { %v187_v18 = vpop.f32.mrf.mxu3 }
 0x121   :  { %v192_v19 = vsel %vm191_vm2, %v187_v18, -inf }
 0x122   :  { %193 = vmax.xlane.f32.xlu0 %v192_v19 }
 0x195   :  { %v194_v23 = vpop.xlane.xlu0 %193 }
 0x196   :  { %v195_v24 = vmax.f32 %v190_v22, %v194_v23 }
 0x198   :  { %v196_v25 = vsub.f32 %v190_v22, %v195_v24  ;;  %247 = vst.msk [vmem:[#allocation3] sm:$0xff] %vm112_vm1, %v195_v24  ;;  %201 = vperm.xlu0 %296, %v195_v24  }
 0x19a   :  { %v197_v32 = vmul.f32 1.442695, %v196_v25 }
 0x20a   :  { %v202_v27 = vpop.permute.xlu0 %201 }
 0x20b   :  { %v204_v28 = vsub.f32 %v187_v18, %v202_v27 }
 0x20d   :  { %v205_v29 = vmul.f32 1.442695, %v204_v28 }
 0x20f   :  { %299 = vpow2.f32 %v205_v29 }
 0x210   :  { %301 = vpow2.f32 %v197_v32 }
 0x215   :  { %v300_v30 = vpop.eup %299 }
 0x216   :  { %283 = vmatmul.msk.f32.vlgmr.msrb.gmra.mxu3 %vm191_vm2, %v300_v30  ;;  %v209_v31 = vsel %vm191_vm2, %v300_v30, 0.0  ;;  %v302_v33 = vpop.eup %301 }
 0x217   :  { %210 = vadd.xlane.f32.xlu1 %v209_v31  ;;  %v208_v35 = vmul.f32 %v302_v33, %v207_v34 }
 0x230   :  { %218 = vperm.xlu1 %297, %v302_v33  }
 0x28a   :  { %v211_v36 = vpop.xlane.xlu1 %210 }
 0x28b   :  { %v212_v37 = vadd.f32 %v211_v36, %v208_v35 }
 0x28d   :  { %214 = vst.msk [vmem:[#allocation4] sm:$0xff] %vm112_vm1, %v212_v37 }
 0x294   :  { %v251_v38 = vld [vmem:[#allocation4] sm:$0xff] }
 0x295   :  { %303 = vrcp.f32 %v251_v38 }
 0x299   :  { %v242_v42 = vpop.f32.mrf.mxu3 }
 0x29b   :  { %v304_v39 = vpop.eup %303 }
 0x29c   :  { %256 = vperm.xlu2 %298, %v304_v39  }
 0x2a2   :  { %v219_v40 = vpop.permute.xlu1 %218 }
 0x2a3   :  { %v221_v41 = vmul.f32 0.0, %v219_v40 }
 0x2a5   :  { %v245_v43 = vadd.f32 %v242_v42, %v221_v41 }
 0x2f6   :  { %v257_v44 = vpop.permute.xlu2 %256 }
 0x2f7   :  { %v259_v45 = vmul.f32 %v257_v44, %v245_v43 }
 0x2f9   :  { %260 = vst [vmem:[#allocation14] sm:$0xff] %v259_v45 }
 0x2fa   :  { %271 = dma.vmem_to_hbm [thread:$0]  %s267_s3, 128, %s269_s13, [#allocation8]  }
 0x2fb   :  { %431 = dma.done.wait [#allocation8], 128  }
 0x2fc   :  { %432 = vsyncadd [#allocation8], 4294967168 }
 0x2fd   :  { %276 = vsyncpa [#allocation7], 1 }
 0x2fe   :  { %277 = vsyncpa [#allocation10], 1 }
 0x2ff   :  { %278 = vsyncpa [#allocation13], 1 }
 0x300   :  { %279 = vsyncpa [#allocation8], 1 }

</bundles_post_ra>
